<compile_context>
chip_gen: v7x
topology: tpu7x:2x2x1
jax: 0.10.0
libtpu: 0.0.40
codegen_flags: <defaults>
</compile_context>

<pallas_src>
import functools

import jax
import jax.numpy as jnp
from jax import lax
from jax.experimental import pallas as pl
from jax.experimental.pallas import tpu as pltpu


# ---------------------------------------------------------------------------
# VMEM budgeting / tiling helpers
# ---------------------------------------------------------------------------
_ROW_ALIGN = 32  # int8 A row tiles: keep 32-aligned (int8 sublane packing)


def _vmem_capacity_bytes():
    """Chip-aware physical VMEM capacity (fallback: v7x-sized 64 MiB)."""
    try:
        return int(pltpu.get_tpu_info().vmem_capacity_bytes)
    except Exception:
        return 64 << 20


def _choose_row_tile(n, tile_budget_bytes, a_bytes_per_elem=1):
    """Row tile of A: fits half the budget double-buffered, >= 2 grid steps."""
    if n <= _ROW_ALIGN:
        return n  # single (full-array) block; nothing useful to split
    # VMEM cap: double-buffered (tm, n) A tile gets at most half the budget.
    vmem_rows = (tile_budget_bytes // 2) // (2 * a_bytes_per_elem * n)
    # Aim for ~8 grid steps so the A-tile DMA pipelines with compute (v5e) and
    # the "parallel" axis can shard across v7x's two TensorCores.
    target_rows = pl.cdiv(n, 8)
    rows = min(max(vmem_rows, _ROW_ALIGN), 2048, max(target_rows, _ROW_ALIGN))
    rows = min(rows, pl.cdiv(n, 2))  # guarantee >= 2 grid steps
    rows = max(_ROW_ALIGN, (rows // _ROW_ALIGN) * _ROW_ALIGN)
    return min(rows, n)


def _vmem_limit(moving_bytes, resident_bytes, scratch_bytes, cap_bytes):
    """vmem_limit_bytes: moving AND resident blocks counted double-buffered,
    plus room for the kernels' f32 intermediates and Mosaic slack."""
    need = 2 * (moving_bytes + resident_bytes) + scratch_bytes + (4 << 20)
    return int(min(max(need, 16 << 20), cap_bytes - (8 << 20)))


# ---------------------------------------------------------------------------
# Pallas kernels
# ---------------------------------------------------------------------------
def _gcn_conv1_kernel(a_ref, xw1_ref, b1_ref, h1_ref):
    """H1_tile = relu(A_q_tile @ (scale * X @ W1) + b1); f32 accumulation."""
    a = a_ref[...].astype(jnp.bfloat16)          # (tm, N) int8 -> bf16 (exact)
    h = jnp.dot(a, xw1_ref[...], preferred_element_type=jnp.float32)   # (tm, hid)
    h1_ref[...] = jnp.maximum(h + b1_ref[...], 0.0).astype(h1_ref.dtype)


def _gcn_conv2_head_kernel(a_ref, h1_ref, w2_ref, b2_ref, wf_ref, bf_ref, o_ref,
                           *, lane_major_out):
    """H2_tile = relu((A_q_tile @ H1) @ (scale*W2) + b2); out = H2 @ Wfc + bfc."""
    a = a_ref[...].astype(jnp.bfloat16)                                 # (tm, N)
    ah = jnp.dot(a, h1_ref[...], preferred_element_type=jnp.float32)    # (tm, hid)
    h2 = jnp.dot(ah, w2_ref[...], preferred_element_type=jnp.float32) + b2_ref[...]
    h2 = jnp.maximum(h2, 0.0)                                           # (tm, hid)
    wf = wf_ref[...]                                                    # (hid, F_out)
    if lane_major_out:
        # Lane-dense (F_out, tm) store; contract wf's hid axis with h2's hid
        # axis directly -- no in-kernel transpose of resident operands.
        out = lax.dot_general(wf, h2, (((0,), (1,)), ((), ())),
                              preferred_element_type=jnp.float32) + bf_ref[...]
    else:
        out = jnp.dot(h2, wf, preferred_element_type=jnp.float32) + bf_ref[...]
    o_ref[...] = out.astype(o_ref.dtype)


# ---------------------------------------------------------------------------
# Wrapper: row-tiled, parallel-semantics pallas_calls
# ---------------------------------------------------------------------------
def gcn_forward_pallas(a_q, a_scale, x, w1, b1, w2, b2, wf, bf):
    n, _ = x.shape
    hid = w1.shape[1]
    f_out = wf.shape[1]

    cap = _vmem_capacity_bytes()
    a_bytes = a_q.dtype.itemsize
    tm = _choose_row_tile(n, cap // 2, a_bytes_per_elem=a_bytes)
    grid = (pl.cdiv(n, tm),)
    a_tile_bytes = tm * n * a_bytes

    # Fold the dequantization scale into the small weights (A ~= scale * A_q):
    #   relu(A @ (X W1) + b1)    = relu(A_q @ (scale * X W1) + b1)
    #   relu((A @ H1) W2 + b2)   = relu((A_q @ H1) (scale * W2) + b2)
    xw1 = ((x.astype(jnp.float32) @ w1) * a_scale).astype(jnp.bfloat16)   # (N, hid)
    w2_s = (w2 * a_scale).astype(jnp.float32)

    def whole(shape):
        # Resident (constant-index) whole-array block.
        return pl.BlockSpec(shape, lambda i: tuple(0 for _ in shape))

    # ---- layer 1: H1 = relu(A @ XW1 + b1) -----------------------------------
    vmem1 = _vmem_limit(
        moving_bytes=a_tile_bytes + tm * hid * 2,
        resident_bytes=n * hid * 2 + hid * 4,
        scratch_bytes=2 * tm * hid * 4,
        cap_bytes=cap)
    h1 = pl.pallas_call(
        _gcn_conv1_kernel,
        out_shape=jax.ShapeDtypeStruct((n, hid), jnp.bfloat16),
        grid=grid,
        in_specs=[
            pl.BlockSpec((tm, n), lambda i: (i, 0)),   # A_q row tile (int8)
            whole((n, hid)),                           # scale * X @ W1 (bf16)
            whole((1, hid)),                           # b1
        ],
        out_specs=pl.BlockSpec((tm, hid), lambda i: (i, 0)),
        compiler_params=pltpu.CompilerParams(
            dimension_semantics=("parallel",),
            vmem_limit_bytes=vmem1),
    )(a_q, xw1, b1)

    # ---- layer 2 + head: out = relu((A @ H1) @ W2 + b2) @ Wfc + bfc ---------
    lane_major = (tm % 128 == 0)
    if lane_major:
        out_shape = jax.ShapeDtypeStruct((f_out, n), jnp.float32)
        out_spec = pl.BlockSpec((f_out, tm), lambda i: (0, i))
        bf_arg = bf.reshape(f_out, 1)
        bf_spec = whole((f_out, 1))
    else:
        out_shape = jax.ShapeDtypeStruct((n, f_out), jnp.float32)
        out_spec = pl.BlockSpec((tm, f_out), lambda i: (i, 0))
        bf_arg = bf.reshape(1, f_out)
        bf_spec = whole((1, f_out))

    vmem2 = _vmem_limit(
        moving_bytes=a_tile_bytes + tm * max(f_out, 1) * 4,
        resident_bytes=(n * hid * 2 + hid * hid * 4 + hid * 4
                        + hid * f_out * 4 + f_out * 4),
        scratch_bytes=3 * tm * hid * 4,
        cap_bytes=cap)
    out = pl.pallas_call(
        functools.partial(_gcn_conv2_head_kernel, lane_major_out=lane_major),
        out_shape=out_shape,
        grid=grid,
        in_specs=[
            pl.BlockSpec((tm, n), lambda i: (i, 0)),   # A_q row tile (int8)
            whole((n, hid)),                           # H1 (bf16, resident)
            whole((hid, hid)),                         # scale * W2
            whole((1, hid)),                           # b2
            whole((hid, f_out)),                       # Wfc (no transposes)
            bf_spec,                                   # bfc
        ],
        out_specs=out_spec,
        compiler_params=pltpu.CompilerParams(
            dimension_semantics=("parallel",),
            vmem_limit_bytes=vmem2),
    )(a_q, h1, w2_s, b2, wf, bf_arg)

    return out.T if lane_major else out


# ---------------------------------------------------------------------------
# Glue: GCN-normalized dense adjacency, built directly in the kernel dtype
# (int8 + one global scale).  Mirrors torch_geometric gcn_norm,
# add_self_loops=True.
# ---------------------------------------------------------------------------
def build_normalized_adjacency_q(edge_index, edge_weight, num_nodes):
    row = edge_index[0]                       # source nodes j
    col = edge_index[1]                       # target nodes i
    loop = jnp.arange(num_nodes, dtype=edge_index.dtype)
    row = jnp.concatenate([row, loop])
    col = jnp.concatenate([col, loop])
    ew = jnp.concatenate(
        [edge_weight.astype(jnp.float32), jnp.ones((num_nodes,), jnp.float32)])

    deg = jnp.zeros((num_nodes,), jnp.float32).at[col].add(ew)
    deg_inv_sqrt = jnp.where(deg > 0.0, lax.rsqrt(deg), 0.0)
    norm = deg_inv_sqrt[row] * ew * deg_inv_sqrt[col]

    # out[i] = sum_j A[i, j] * x[j]   (aggregate at target i from source j)
    a = jnp.zeros((num_nodes, num_nodes), jnp.float32).at[col, row].add(norm)

    # Symmetric int8 quantization: A ~= scale * a_q.  The f32 (N,N) is only a
    # transient needed for duplicate-edge accumulation; the kernels stream the
    # int8 version (half the bytes of bf16, quarter of f32).
    amax = jnp.max(jnp.abs(a))
    scale = jnp.where(amax > 0.0, amax / 127.0, 1.0)
    a_q = jnp.clip(jnp.round(a / scale), -127.0, 127.0).astype(jnp.int8)
    return a_q, scale


# ---------------------------------------------------------------------------
# GCN module equivalent (eval mode, MAT=False)
# ---------------------------------------------------------------------------
def gcn_apply(params, x, c, edge_index, edge_weight):
    x = x.astype(jnp.float32)
    c = c.astype(jnp.float32)   # unused when edge_index / edge_weight are given
    n = x.shape[0]
    a_q, a_scale = build_normalized_adjacency_q(edge_index, edge_weight, n)
    return gcn_forward_pallas(
        a_q, a_scale, x,
        params["w1"], params["b1"],
        params["w2"], params["b2"],
        params["wf"], params["bf"],
    )


def init_params(key, num_features_in=3, hidden=32, num_features_out=1):
    k1, k2, k3 = jax.random.split(key, 3)
    # weights stored as (in, out) for right-multiplication: X @ W
    w1 = jax.random.normal(k1, (num_features_in, hidden), jnp.float32) * 0.1
    w2 = jax.random.normal(k2, (hidden, hidden), jnp.float32) * 0.1
    wf = jax.random.normal(k3, (hidden, num_features_out), jnp.float32) * 0.1
    b1 = jnp.zeros((1, hidden), jnp.float32)
    b2 = jnp.zeros((1, hidden), jnp.float32)
    bf = jnp.full((1, num_features_out), 0.01, jnp.float32)
    return {"w1": w1, "b1": b1, "w2": w2, "b2": b2, "wf": wf, "bf": bf}


if __name__ == "__main__":
    key = jax.random.PRNGKey(0)
    kx, kc, ke, kw, kp = jax.random.split(key, 5)

    N = 64                 # number of nodes
    F_IN = 3               # num_features_in
    F_OUT = 1              # num_features_out
    K = 4                  # edges per node (synthetic graph; knn_graph path unused)

    x = jax.random.normal(kx, (N, F_IN), jnp.float32)         # node features
    c = jax.random.normal(kc, (N, 2), jnp.float32)             # coordinates (unused)

    # deterministic synthetic edge list: each node receives K random sources
    src = jax.random.randint(ke, (N * K,), 0, N, dtype=jnp.int32)
    dst = jnp.repeat(jnp.arange(N, dtype=jnp.int32), K)
    edge_index = jnp.stack([src, dst], axis=0)                  # (2, E)
    edge_weight = jax.random.uniform(kw, (N * K,), jnp.float32, 0.1, 1.0)

    params = init_params(kp, F_IN, 32, F_OUT)

    out = gcn_apply(params, x, c, edge_index, edge_weight)
    out = jax.block_until_ready(out)

    # Reference in plain f32 JAX using the same (intentionally) quantized A,
    # dequantized -- isolates kernel correctness from the deliberate int8
    # approximation of A_norm.
    a_q, a_scale = build_normalized_adjacency_q(edge_index, edge_weight, N)
    a_deq = a_scale * a_q.astype(jnp.float32)
    h1 = jnp.maximum(a_deq @ (x @ params["w1"]) + params["b1"], 0.0)
    h2 = jnp.maximum(a_deq @ (h1 @ params["w2"]) + params["b2"], 0.0)
    ref = h2 @ params["wf"] + params["bf"]

    assert out.shape == (N, F_OUT)
    assert bool(jnp.all(jnp.isfinite(out)))
    assert jnp.allclose(out, ref, atol=2e-2, rtol=5e-2), (
        float(jnp.max(jnp.abs(out - ref))))

    print("KERNEL_OK")
</pallas_src>

<mosaic_0001>
module attributes {stable_mosaic.version = 11 : i64} {
  func.func @_gcn_conv1_kernel(%arg0: i32, %arg1: memref<32x64xi8, #tpu.memory_space<vmem>>, %arg2: memref<64x32xbf16, #tpu.memory_space<vmem>>, %arg3: memref<1x32xf32, #tpu.memory_space<vmem>>, %arg4: memref<32x32xbf16, #tpu.memory_space<vmem>>) attributes {dimension_semantics = [#tpu.dimension_semantics<parallel>], iteration_bounds = array<i64: 2>, scalar_prefetch = 0 : i64, scratch_operands = 0 : i64, tpu.core_type = #tpu.core_type<tc>, window_params = [{transform_indices = @transform_0, window_bounds = array<i64: 32, 64>}, {pipeline_mode = #tpu.pipeline_mode<synchronous>, transform_indices = @transform_1, window_bounds = array<i64: 64, 32>}, {pipeline_mode = #tpu.pipeline_mode<synchronous>, transform_indices = @transform_2, window_bounds = array<i64: 1, 32>}, {transform_indices = @transform_3, window_bounds = array<i64: 32, 32>}]} {
    %c0 = arith.constant 0 : index
    %c0_0 = arith.constant 0 : index
    %0 = vector.load %arg1[%c0, %c0_0] : memref<32x64xi8, #tpu.memory_space<vmem>>, vector<32x64xi8>
    %1 = arith.sitofp %0 : vector<32x64xi8> to vector<32x64xbf16>
    %c0_1 = arith.constant 0 : index
    %c0_2 = arith.constant 0 : index
    %2 = vector.load %arg2[%c0_1, %c0_2] : memref<64x32xbf16, #tpu.memory_space<vmem>>, vector<64x32xbf16>
    %cst = arith.constant dense<0.000000e+00> : vector<32x32xf32>
    %3 = tpu.matmul %1, %2, %cst {dimension_numbers = #tpu.dot_dimension_numbers<[1], [0], [0], [1], [0, 0, 1, 1], [], []>} : vector<32x64xbf16>, vector<64x32xbf16>, vector<32x32xf32> -> vector<32x32xf32>
    %c0_3 = arith.constant 0 : index
    %c0_4 = arith.constant 0 : index
    %4 = vector.load %arg3[%c0_3, %c0_4] : memref<1x32xf32, #tpu.memory_space<vmem>>, vector<1x32xf32>
    %5 = vector.broadcast %4 : vector<1x32xf32> to vector<32x32xf32>
    %6 = arith.addf %3, %5 : vector<32x32xf32>
    %cst_5 = arith.constant 0.000000e+00 : f32
    %7 = vector.broadcast %cst_5 : f32 to vector<32x32xf32>
    %8 = arith.maximumf %6, %7 : vector<32x32xf32>
    %9 = arith.truncf %8 : vector<32x32xf32> to vector<32x32xbf16>
    %c0_6 = arith.constant 0 : index
    %c0_7 = arith.constant 0 : index
    %10 = vector.load %arg4[%c0_6, %c0_7] : memref<32x32xbf16, #tpu.memory_space<vmem>>, vector<32x32xbf16>
    tpu.vector_store %arg4[%c0_6, %c0_7], %9 {strides = array<i32>} : memref<32x32xbf16, #tpu.memory_space<vmem>>, vector<32x32xbf16>,
    return
  }
  func.func @transform_0(%arg0: i32) -> (i32, i32) {
    %c0_i32 = arith.constant 0 : i32
    %c0_i32_0 = arith.constant 0 : i32
    return %arg0, %c0_i32 : i32, i32
  }
  func.func @transform_1(%arg0: i32) -> (i32, i32) {
    %c0_i32 = arith.constant 0 : i32
    %c0_i32_0 = arith.constant 0 : i32
    %c0_i32_1 = arith.constant 0 : i32
    return %c0_i32, %c0_i32_0 : i32, i32
  }
  func.func @transform_2(%arg0: i32) -> (i32, i32) {
    %c0_i32 = arith.constant 0 : i32
    %c0_i32_0 = arith.constant 0 : i32
    %c0_i32_1 = arith.constant 0 : i32
    return %c0_i32, %c0_i32_0 : i32, i32
  }
  func.func @transform_3(%arg0: i32) -> (i32, i32) {
    %c0_i32 = arith.constant 0 : i32
    %c0_i32_0 = arith.constant 0 : i32
    return %arg0, %c0_i32 : i32, i32
  }
}

</mosaic_0001>

<bundles_post_ra>
// kernel: tpu_custom_call.1
= control target key start
LH: loop header
LB: loop body
LE: loop exit
PB: predicated region body
PF: predicated region fallthrough
CT: control target
= control target key end

     0   :  { %s432_s12 = smov 0   ;;  %s469_s0 = inlined_call_operand.vmem [shape: s8[64,64], index: 0, kind: input, shape index: {}]   ;;  %s470_s1 = inlined_call_operand.vmem [shape: bf16[64,32], index: 1, kind: input, shape index: {}]   ;;  %s471_s2 = inlined_call_operand.vmem [shape: f32[1,32], index: 2, kind: input, shape index: {}]   ;;  %s472_s3 = inlined_call_operand.vmem [shape: bf16[64,32], index: 3, kind: output, shape index: {}]  }
   0x1 LB: > { %s438_s13 = sadd.s32 4294967295, %s410_s12   ;;  %p353_p0 = scmp.ge.s32.totalorder %s410_s12, 1  ;;  %s410_s12 = sphi %s432_s12, %s13_s12  }
   0x2   : > { %p136_p1 = scmp.lt.s32.totalorder %s410_s12, 3 }
   0x4   : > { %p137_p2 = pnand %p353_p0, %p136_p1 }
   0x5   : > { %v400_v0 = vld [vmem:[%s470_s1] sm:$0xff] (!%p137_p2)   ;;  %p159_p3 = scmp.lt.s32.totalorder (!%p137_p2), %s438_s13, 1  ;;  %v401_v1 = vld [vmem:[%s470_s1 + $0x8] sm:$0xff] (!%p137_p2)   ;;  %v402_v2 = vld [vmem:[%s470_s1 + $0x10] sm:$0xff] (!%p137_p2)   ;;  %vm212_vm0 = vcmask (!%p137_p2), 523264   ;;  %s355_s27 = sshll.u32 (!%p137_p2), %s438_s13, 2 }
   0x6   : > { %140 = sbr.rel (%p137_p2) target bundleno = 244 (0xf4), region = 32  ;;  %380 = vmatprep.subr.bf16.mxu0 (!%p137_p2), %v400_v0  ;;  %v403_v5 = vld [vmem:[%s470_s1 + $0x18] sm:$0xff] (!%p137_p2)   ;;  %p164_p4 = scmp.lt.s32.totalorder (!%p137_p2), %s355_s27, 7  ;;  %v357_v7 = vld [vmem:[%s471_s2] ss:$0 sm:$0xff] (!%p137_p2)  ;;  %vm288_vm1 = vcmask (!%p137_p2), 257024  }
   0x7   : > { %381 = vmatpush3.bf16.msra.mxu0 (!%p137_p2), %v400_v0 }
   0x8   : > { %382 = vmatprep.subr.bf16.mxu0 (!%p137_p2), %v401_v1 }
   0xb   : > { %383 = vmatpush3.bf16.msra.mxu0 (!%p137_p2), %v401_v1 }
   0xc   : > { %384 = vmatprep.subr.bf16.mxu0 (!%p137_p2), %v402_v2 }
   0xd   : > { %s160_s18 = scalar_select %p159_p3, %s438_s13, 1 }
   0xe   : > { %s474_s27 = smov (!%p164_p4, %s355_s27), 7 }
   0xf   : > { %s354_s21 = sshll.u32 %s160_s18, 3  ;;  %385 = vmatpush3.bf16.msra.mxu0 %v402_v2  ;;  %s356_s30 = sshll.u32 %s474_s27, 2 }
  0x10   : > { %s162_s24 = scalar_lea.vmem %s469_s0, %s354_s21  ;;  %386 = vmatprep.subr.bf16.mxu0 %v403_v5  ;;  %s167_s6 = scalar_lea.vmem %s472_s3, %s356_s30 }
  0x11   : > { %v170_v3 = vld [vmem:[%s162_s24] sm:$0xff] }
  0x12   : > { %v171_v4 = vunpack.c.l.s8.bf16 %v170_v3  ;;  %v172_v6 = vunpack.c.h.s8.bf16 %v170_v3 }
  0x13   : > { %387 = vmatpush3.bf16.msra.mxu0 %v403_v5 }
  0x14   : > { %388 = vmatprep.mubr.msk.bf16.mxu0 %vm212_vm0, %v171_v4 }
  0x16   : > { %389 = vmatmul.mubr.msk.bf16.vlgmr.msra.gmra.mrb[0].mxu0 %vm212_vm0, %v172_v6 }
  0xe9   : > { %v390_v8 = vpop.f32.mrb[0].mxu0 }
  0xea   : > { %v262_v9 = vadd.f32 %v390_v8, %v357_v7  ;;  %v253_v10 = vpop.f32.mrb[1].mxu0 }
  0xeb   : > { %v254_v11 = vadd.f32 %v357_v7, %v253_v10  ;;  %v391_v12 = vpop.f32.mrb[2].mxu0 }
  0xec   : > { %v265_v13 = vadd.f32 %v391_v12, %v357_v7  ;;  %v256_v14 = vpop.f32.mrb[3].mxu0  ;;  %v270_v17 = vmax.f32 %v262_v9, 0.0 }
  0xed   : > { %v268_v15 = vmax.f32 %v254_v11, 0.0  ;;  %v257_v16 = vadd.f32 %v357_v7, %v256_v14 }
  0xee   : > { %v271_v19 = vmax.f32 %v265_v13, 0.0  ;;  %v372_v22 = vpack.c.bf16 %v270_v17, %v270_v17 }
  0xef   : > { %v370_v18 = vpack.c.bf16 %v268_v15, %v268_v15  ;;  %v269_v20 = vmax.f32 %v257_v16, 0.0 }
  0xf0   : > { %v373_v23 = vpack.c.bf16 %v271_v19, %v271_v19  ;;  %291 = vst.msk [vmem:[%s167_s6 + $0x8] sm:$0xf] %vm288_vm1, %v372_v22 }
  0xf1   : > { %289 = vst.msk [vmem:[%s167_s6] sm:$0xf] %vm288_vm1, %v370_v18  ;;  %v371_v21 = vpack.c.bf16 %v269_v20, %v269_v20 }
  0xf2   : > { %292 = vst.msk [vmem:[%s167_s6 + $0xc] sm:$0xf] %vm288_vm1, %v373_v23 }
  0xf3   : > { %290 = vst.msk [vmem:[%s167_s6 + $0x4] sm:$0xf] %vm288_vm1, %v371_v21 }
  0xf4 PF: > { %s13_s12 = sadd.s32 1, %s410_s12  }
  0xf5   : > { %p10_p5 = scmp.ge.s32.totalorder %s13_s12, 4  }
  0xf7   :  { %12 = sbr.rel (!%p10_p5) target bundleno = 1 (0x1), region = 62 }

</bundles_post_ra>
